<compile_context>
chip_gen: v7x
topology: tpu7x:2x2x1
jax: 0.10.0
libtpu: 0.0.40
codegen_flags: <defaults>
</compile_context>

<pallas_src>
import functools

import numpy as np
import jax
import jax.numpy as jnp
from jax.experimental import pallas as pl
from jax.experimental.pallas import tpu as pltpu

NEG_INF = np.float32(-np.inf)
# Safe cross-generation default. v6e (128 MiB VMEM) tolerates ~512; v5e's 16 MiB scoped
# default and v7x's 64 MiB physical VMEM prefer 256-384 for wide (W~2048) maps.
DEFAULT_TILE_H = 256


# -----------------------------------------------------------------------------
# Pallas kernel: 3x3 NMS mask for one row tile (1-row halos passed as one (2,W) block)
# -----------------------------------------------------------------------------
def _nms_kernel(rep_ref, halo_ref, mask_ref, *, rep_thr, valid_h, tile_h, ragged):
    rp = rep_ref[...]                        # (TH, W) f32 repeatability tile
    halo = halo_ref[...]                     # (2, W): row above / row below this tile
    up = halo[0:1]                           # (1, W)  (-inf at the image top)
    dn = halo[1:2]                           # (1, W)  (-inf at the image bottom)
    TH, W = rp.shape
    neg = jnp.float32(NEG_INF)

    if ragged:
        # Last grid block only partially covers the image: rows past H are undefined DMA
        # fill. Force them to -inf BEFORE the vertical max so garbage can never become the
        # "below" neighbour of the last valid row (and can never pass the threshold).
        g_row = jax.lax.broadcasted_iota(jnp.int32, (TH, W), 0) + pl.program_id(0) * tile_h
        rp = jnp.where(g_row < valid_h, rp, neg)

    # vertical 3-max (sublane direction); per-tile halo rows give exact -inf border semantics
    above = jnp.concatenate([up, rp[: TH - 1]], axis=0)          # value at row i-1
    below = jnp.concatenate([rp[1:], dn], axis=0)                # value at row i+1
    vmax = jnp.maximum(jnp.maximum(above, below), rp)

    # horizontal 3-max (lane direction); explicit -inf edge column reproduces PyTorch's
    # -inf padding at the left/right image borders (no wraparound, no edge fix-up needed).
    neg_col = jnp.full((TH, 1), neg, jnp.float32)
    left_nb = jnp.concatenate([neg_col, vmax[:, : W - 1]], axis=1)   # value at col j-1
    right_nb = jnp.concatenate([vmax[:, 1:], neg_col], axis=1)       # value at col j+1
    m3 = jnp.maximum(jnp.maximum(left_nb, right_nb), vmax)

    keep = (rp == m3) & (rp >= rep_thr)
    mask_ref[...] = keep.astype(jnp.int8)


def _pick_tile_rows(H, tile_h):
    """Choose the per-grid-step row count (static)."""
    if H <= tile_h:
        return H, 1
    th = max(32, (tile_h // 32) * 32)        # sublane- and int8-tile aligned
    if th >= H:
        return H, 1
    n = -(-H // th)
    if n > 1 and n % 2 == 1:
        # Best-effort: prefer an even tile count so v7x's two TensorCores stay balanced.
        n_even = n + 1
        th2 = max(32, ((-(-H // n_even)) + 31) // 32 * 32)
        n2 = -(-H // th2)
        if th2 < H and n2 % 2 == 0:
            th, n = th2, n2
    return th, n


@functools.partial(jax.jit, static_argnames=("rep_thr", "tile_h"))
def nms_mask_pallas(rep, rep_thr, tile_h=DEFAULT_TILE_H):
    """rep: (..., H, W) float map (leading dims all 1) -> (H, W) int8 mask of 3x3 local
    maxima that are >= rep_thr. Everything below runs as one jitted program."""
    if rep.ndim > 2:
        assert all(int(d) == 1 for d in rep.shape[:-2]), "batch/channel must be 1"
    H, W = int(rep.shape[-2]), int(rep.shape[-1])
    assert W >= 2 and H >= 1
    rep = rep.reshape(H, W).astype(jnp.float32)   # free reshape + (no-op) cast under jit

    th, n_tiles = _pick_tile_rows(H, tile_h)
    ragged = (n_tiles * th) != H

    # Fused per-tile halo rows: halo[i, 0] = row above tile i, halo[i, 1] = row below tile i
    # (-inf at the image borders). Tiny (n_tiles, 2, W) array -> one small DMA per step.
    neg_row = jnp.full((1, W), NEG_INF, jnp.float32)
    if n_tiles > 1:
        up = jnp.concatenate([neg_row, rep[th - 1::th][: n_tiles - 1]], axis=0)
        dn = jnp.concatenate([rep[th::th][: n_tiles - 1], neg_row], axis=0)
    else:
        up = neg_row
        dn = neg_row
    halo = jnp.stack([up, dn], axis=1)            # (n_tiles, 2, W)

    kernel = functools.partial(
        _nms_kernel, rep_thr=float(rep_thr), valid_h=H, tile_h=th, ragged=ragged)

    mask = pl.pallas_call(
        kernel,
        out_shape=jax.ShapeDtypeStruct((H, W), jnp.int8),
        grid=(n_tiles,),
        in_specs=[
            pl.BlockSpec((th, W), lambda i: (i, 0)),
            pl.BlockSpec((None, 2, W), lambda i: (i, 0, 0)),   # squeezed tile axis
        ],
        out_specs=pl.BlockSpec((th, W), lambda i: (i, 0)),
        compiler_params=pltpu.CompilerParams(dimension_semantics=("parallel",)),
        cost_estimate=pl.CostEstimate(
            flops=10 * H * W, transcendentals=0, bytes_accessed=5 * H * W),
    )(rep, halo)
    return mask


# -----------------------------------------------------------------------------
# Module wrapper (same interface / semantics as the PyTorch NonMaxSuppression)
# -----------------------------------------------------------------------------
class NonMaxSuppression:
    def __init__(self, rel_thr=0.7, rep_thr=0.7, tile_h=DEFAULT_TILE_H):
        self.rel_thr = rel_thr   # kept for interface parity; unused in forward (as in the reference)
        self.rep_thr = rep_thr
        self.tile_h = tile_h

    def __call__(self, reliability, repeatability, **kw):
        assert len(reliability) == len(repeatability) == 1
        rep = repeatability[0]                                   # (1, 1, H, W)
        mask = nms_mask_pallas(rep, rep_thr=float(self.rep_thr), tile_h=int(self.tile_h))
        # TODO(synk): torch.nonzero yields a dynamic shape; the boolean mask is produced on
        # device (lane-dense int8) and the index gather runs host-side.
        ys, xs = np.nonzero(np.asarray(jax.device_get(mask)))
        return jnp.stack([jnp.asarray(ys, jnp.int32), jnp.asarray(xs, jnp.int32)], axis=0)


# -----------------------------------------------------------------------------
# Demo / self-check
# -----------------------------------------------------------------------------
def _reference_mask(rep_np, rep_thr):
    H, W = rep_np.shape
    padded = np.full((H + 2, W + 2), -np.inf, np.float32)
    padded[1:-1, 1:-1] = rep_np
    m = np.full((H, W), -np.inf, np.float32)
    for di in range(3):
        for dj in range(3):
            m = np.maximum(m, padded[di:di + H, dj:dj + W])
    return (rep_np == m) & (rep_np >= rep_thr)


if __name__ == "__main__":
    key = jax.random.PRNGKey(0)
    k1, k2, k3, k4 = jax.random.split(key, 4)

    # tile_h=64 just to exercise the multi-tile / ragged-last-tile paths at these small
    # demo sizes; production default is DEFAULT_TILE_H=256 rows per grid step.
    nms = NonMaxSuppression(rel_thr=0.7, rep_thr=0.7, tile_h=64)

    cases = [((192, 256), k1),   # multi-tile, evenly divisible
             ((100, 128), k2),   # multi-tile, ragged last tile
             ((56, 128), k4)]    # single full-height tile
    for (H, W), kk in cases:
        rep = jax.random.uniform(kk, (1, 1, H, W), jnp.float32)
        rel = jax.random.uniform(k3, (1, 1, H, W), jnp.float32)   # unused by forward (parity)

        yx = nms([rel], [rep])
        yx = jax.block_until_ready(yx)
        got = np.asarray(yx)

        ref_mask = _reference_mask(np.asarray(rep[0, 0]), 0.7)
        ry, rx = np.nonzero(ref_mask)
        ref = np.stack([ry, rx], axis=0)

        assert got.shape == ref.shape and got.shape[0] == 2 and got.shape[1] > 0, (got.shape, ref.shape)
        assert np.array_equal(got, ref), f"Pallas NMS mask mismatch vs reference for {(H, W)}"

    print("KERNEL_OK")
</pallas_src>

<mosaic_0001>
module attributes {stable_mosaic.version = 11 : i64} {
  func.func @_nms_kernel(%arg0: i32, %arg1: memref<64x256xf32, #tpu.memory_space<vmem>>, %arg2: memref<1x2x256xf32, #tpu.memory_space<vmem>>, %arg3: memref<64x256xi8, #tpu.memory_space<vmem>>) attributes {dimension_semantics = [#tpu.dimension_semantics<parallel>], iteration_bounds = array<i64: 3>, scalar_prefetch = 0 : i64, scratch_operands = 0 : i64, tpu.core_type = #tpu.core_type<tc>, window_params = [{transform_indices = @transform_0, window_bounds = array<i64: 64, 256>}, {transform_indices = @transform_1, window_bounds = array<i64: 1, 2, 256>}, {transform_indices = @transform_2, window_bounds = array<i64: 64, 256>}]} {
    %c0 = arith.constant 0 : index
    %c0_0 = arith.constant 0 : index
    %0 = vector.load %arg1[%c0, %c0_0] : memref<64x256xf32, #tpu.memory_space<vmem>>, vector<64x256xf32>
    %c0_1 = arith.constant 0 : index
    %c0_2 = arith.constant 0 : index
    %c0_3 = arith.constant 0 : index
    %1 = vector.load %arg2[%c0_1, %c0_2, %c0_3] : memref<1x2x256xf32, #tpu.memory_space<vmem>>, vector<1x2x256xf32>
    %2 = vector.shape_cast %1 : vector<1x2x256xf32> to vector<2x256xf32>
    %3 = vector.extract_strided_slice %2 {offsets = [0, 0], sizes = [1, 256], strides = [1, 1]} : vector<2x256xf32> to vector<1x256xf32>
    %4 = vector.extract_strided_slice %2 {offsets = [1, 0], sizes = [1, 256], strides = [1, 1]} : vector<2x256xf32> to vector<1x256xf32>
    %5 = vector.extract_strided_slice %0 {offsets = [0, 0], sizes = [63, 256], strides = [1, 1]} : vector<64x256xf32> to vector<63x256xf32>
    %6 = tpu.concatenate %3, %5 in 0 : vector<1x256xf32>, vector<63x256xf32> -> vector<64x256xf32>
    %7 = vector.extract_strided_slice %0 {offsets = [1, 0], sizes = [63, 256], strides = [1, 1]} : vector<64x256xf32> to vector<63x256xf32>
    %8 = tpu.concatenate %7, %4 in 0 : vector<63x256xf32>, vector<1x256xf32> -> vector<64x256xf32>
    %9 = arith.maximumf %6, %8 : vector<64x256xf32>
    %10 = arith.maximumf %9, %0 : vector<64x256xf32>
    %cst = arith.constant 0xFF800000 : f32
    %11 = vector.broadcast %cst : f32 to vector<64x1xf32>
    %12 = vector.extract_strided_slice %10 {offsets = [0, 0], sizes = [64, 255], strides = [1, 1]} : vector<64x256xf32> to vector<64x255xf32>
    %13 = tpu.concatenate %11, %12 in 1 : vector<64x1xf32>, vector<64x255xf32> -> vector<64x256xf32>
    %14 = vector.extract_strided_slice %10 {offsets = [0, 1], sizes = [64, 255], strides = [1, 1]} : vector<64x256xf32> to vector<64x255xf32>
    %15 = tpu.concatenate %14, %11 in 1 : vector<64x255xf32>, vector<64x1xf32> -> vector<64x256xf32>
    %16 = arith.maximumf %13, %15 : vector<64x256xf32>
    %17 = arith.maximumf %16, %10 : vector<64x256xf32>
    %18 = arith.cmpf oeq, %0, %17 : vector<64x256xf32>
    %cst_4 = arith.constant 0.699999988 : f32
    %19 = vector.broadcast %cst_4 : f32 to vector<64x256xf32>
    %20 = arith.cmpf oge, %0, %19 : vector<64x256xf32>
    %21 = arith.andi %18, %20 : vector<64x256xi1>
    %22 = arith.extui %21 : vector<64x256xi1> to vector<64x256xi8>
    %c0_5 = arith.constant 0 : index
    %c0_6 = arith.constant 0 : index
    %23 = vector.load %arg3[%c0_5, %c0_6] : memref<64x256xi8, #tpu.memory_space<vmem>>, vector<64x256xi8>
    tpu.vector_store %arg3[%c0_5, %c0_6], %22 {strides = array<i32>} : memref<64x256xi8, #tpu.memory_space<vmem>>, vector<64x256xi8>,
    return
  }
  func.func @transform_0(%arg0: i32) -> (i32, i32) {
    %c0_i32 = arith.constant 0 : i32
    %c0_i32_0 = arith.constant 0 : i32
    return %arg0, %c0_i32 : i32, i32
  }
  func.func @transform_1(%arg0: i32) -> (i32, i32, i32) {
    %c0_i32 = arith.constant 0 : i32
    %c0_i32_0 = arith.constant 0 : i32
    %c0_i32_1 = arith.constant 0 : i32
    return %arg0, %c0_i32, %c0_i32_0 : i32, i32, i32
  }
  func.func @transform_2(%arg0: i32) -> (i32, i32) {
    %c0_i32 = arith.constant 0 : i32
    %c0_i32_0 = arith.constant 0 : i32
    return %arg0, %c0_i32 : i32, i32
  }
}

</mosaic_0001>

<bundles_post_ra>
// kernel: nms_mask_pallas.1
= control target key start
LH: loop header
LB: loop body
LE: loop exit
PB: predicated region body
PF: predicated region fallthrough
CT: control target
= control target key end

     0   :  { %7 = vsyncpa [#allocation3], 0  ;;  %s1526_s0 = inlined_call_operand.hbm [shape: f32[192,256], index: 0, kind: input, shape index: {}]   ;;  %s1527_s1 = inlined_call_operand.vmem [shape: f32[3,2,256], index: 1, kind: input, shape index: {}]   ;;  %s1528_s2 = inlined_call_operand.hbm [shape: s8[192,256], index: 2, kind: output, shape index: {}]  }
   0x1   :  { %9 = vsyncpa [#allocation3 + $0x1], 0 }
   0x2   :  { %10 = vsyncpa [#allocation4], 0 }
   0x3   :  { %12 = vsyncpa [#allocation4 + $0x1], 0  ;;  %s915_s9 = smov 0   ;;  %s917_s10 = smov 0  }
   0x4   :  { %s919_s11 = smov 0   ;;  %s921_s12 = smov 0  }
   0x5 LB: > { %s936_s13 = sadd.s32 4294967295, %s889_s12   ;;  %s717_s14 = sadd.s32 4294967294, %s889_s12   ;;  %s889_s12 = sphi %s921_s12, %s1572_s12   ;;  %s885_s11 = sphi %s919_s11, %s1571_s11   ;;  %s881_s10 = sphi %s917_s10, %s1570_s10   ;;  %s877_s9 = sphi %s915_s9, %s1569_s9  }
   0x6   : > { %s940_s15 = sadd.s32 1, %s889_s12   ;;  %s25_s16 = sadd.s32 1, %s885_s11 }
   0x7   : > { %s22_s17 = ssub.s32 %s889_s12, %s940_s15  ;;  %p32_p0 = scmp.ne.s32.totalorder %s885_s11, %s881_s10 }
   0x8   : > { %p23_p1 = scmp.eq.s32.totalorder %s22_s17, 0  ;;  %p33_p2 = scmp.eq.s32.totalorder %s889_s12, 0 }
   0x9   : > { %p38_p3 = scmp.ne.s32.totalorder %s881_s10, %s877_s9  ;;  %p39_p4 = scmp.eq.s32.totalorder %s936_s13, 0 }
   0xa   : > { %s952_s18 = scalar_select %p23_p1, %s885_s11, %s25_s16  }
   0xb   : > { %p954_p5 = por %p33_p2, %p32_p0  ;;  %p958_p6 = por %p39_p4, %p38_p3 }
   0xc   : > { %p88_p7 = scmp.eq.s32.totalorder %s936_s13, 2  ;;  %p94_p8 = scmp.eq.s32.totalorder %s717_s14, 2 }
   0xd   : > { %p752_p9 = scmp.lt.s32.totalorder %s889_s12, 3  ;;  %s114_s23 = sand.u32 1, %s885_s11  }
   0xe   : > { %p964_p10 = por %p88_p7, %p32_p0  ;;  %p968_p11 = por %p94_p8, %p38_p3 }
   0xf   : > { %s736_s24 = sshll.u32 %s889_s12, 11  ;;  %s720_s25 = sshll.u32 %s114_s23, 7 }
  0x10   : > { %s1535_s21 = scalar_select %p964_p10, 1, 0 }
  0x11   : > { %s1536_s22 = scalar_select %p968_p11, 1, 0 }
  0x12   : > { %s977_s28 = scalar_lea.hbm %s1526_s0, %s736_s24  ;;  %s118_s29 = scalar_lea.vmem [#allocation2], %s720_s25 }
  0x13   : > { %s126_s30 = sshll.u32 %s118_s29, 4  ;;  %p981_p12 = pnand %p752_p9, %p954_p5  ;;  %s985_s30 = int_to_ptr.vmem [resolvable:$true] %s126_s30 }
  0x14   : > { %s987_s4 = scalar_lea.sflag [#allocation3], %s114_s23  ;;  %s793_s5 = scalar_lea.hbm %s977_s28, 2048 }
  0x15   : > { %p794_p13 = scmp.ne.s32.totalorder %s977_s28, %s793_s5  ;;  %p795_p0 = pneg %p981_p12 }
  0x16   : > { %s798_s8 = scalar_lea.hbm %s1526_s0, 6144  ;;  %p799_p3 = scmp.lt.u32.totalorder %s977_s28, %s1526_s0 }
  0x17   : > { %p796_p1 = pnand %p795_p0, %p794_p13  ;;  %p800_p4 = scmp.lt.u32.totalorder %s798_s8, %s793_s5 }
  0x18   : > { %p802_p7 = scmp.lt.u32.totalorder %s793_s5, %s977_s28 }
  0x19   : > { %p797_p2 = pneg %p796_p1  ;;  %p801_p5 = por %p800_p4, %p799_p3 }
  0x1b   : > { %p803_p8 = por %p802_p7, %p801_p5 }
  0x1d   : > { %p804_p9 = pnand %p803_p8, %p797_p2 }
  0x1f   : > { %807 = shalt.err (!%p804_p9)
}
  0x20   : > { %s808_s17 = scalar_lea.vmem %s985_s30, 2048  ;;  %s891_s19 = smov [#allocation2]  }
  0x21   : > { %p809_p13 = scmp.ne.s32.totalorder %s985_s30, %s808_s17  ;;  %s813_s23 = sshll.u32 %s891_s19, 4  ;;  %s814_s23 = int_to_ptr.vmem [resolvable:$false] %s813_s23 }
  0x22   : > { %s815_s24 = scalar_lea.vmem %s814_s23, 4096  ;;  %p816_p10 = scmp.lt.s32.totalorder %s985_s30, %s814_s23 }
  0x23   : > { %p811_p1 = pnand %p809_p13, %p795_p0  ;;  %p817_p3 = scmp.lt.s32.totalorder %s815_s24, %s808_s17 }
  0x25   : > { %p812_p11 = pneg %p811_p1  ;;  %p818_p4 = por %p817_p3, %p816_p10 }
  0x27   : > { %p819_p5 = pnand %p818_p4, %p812_p11 }
  0x29   : > { %822 = shalt.err (!%p819_p5)
}
  0x2a   : > { %s892_s25 = smov 256   ;;  %s893_s26 = smov 16  }
  0x2b   : > { %747 = dma.hbm_to_vmem [thread:$0]  (!%p981_p12), %s977_s28, 2048, %s985_s30, %s987_s4, %s892_s25, %s892_s25, %s893_s26  }
  0x2c   : > { %p724_p0 = scmp.ge.s32.totalorder %s889_s12, 1  ;;  %p142_p2 = scmp.lt.s32.totalorder %s889_s12, 4 }
  0x2e   : > { %p143_p7 = pnand %p724_p0, %p142_p2 }
  0x2f   : > { %s1018_s27 = sand.u32 (!%p143_p7), 1, %s881_s10  }
  0x30   : > { %146 = sbr.rel (%p143_p7) target bundleno = 273 (0x111), region = 28  ;;  %s725_s29 = sshll.u32 (!%p143_p7), %s1018_s27, 7 }
  0x31   : > { %s149_s5 = scalar_lea.sflag (!%p143_p7), [#allocation3], %s1018_s27  ;;  %s1022_s6 = scalar_lea.vmem (!%p143_p7), [#allocation2], %s725_s29 }
  0x37   : > { %868 = dma.done.wait (%p958_p6), %s149_s5, 2048  }
  0x38   : > { %870 = vsyncadd (%p958_p6), %s149_s5, 4294965248  ;;  %p179_p10 = scmp.lt.s32.totalorder %s936_s13, 2  ;;  %v205_v0 = vlaneseq  ;;  %v1038_v4 = vld [vmem:[%s1022_s6] sm:$0xff]  ;;  %v1041_v5 = vld [vmem:[%s1022_s6 + $0x10] sm:$0xff]  ;;  %vm231_vm0 = vcmask 1040384   ;;  %vm280_vm1 = vcmask 1046528  }
  0x39   : > { %v232_v8 = vrot.slane %v1038_v4, 7  ;;  %v281_v9 = vrot.slane %v1038_v4, 1  ;;  %v282_v10 = vrot.slane %v1041_v5, 1  ;;  %v1050_v11 = vld [vmem:[%s1022_s6 + $0x20] sm:$0xff]  ;;  %v1053_v12 = vld [vmem:[%s1022_s6 + $0x8] sm:$0xff]  ;;  %v1056_v13 = vld [vmem:[%s1022_s6 + $0x18] sm:$0xff] }
  0x3a   : > { %s180_s28 = scalar_select %p179_p10, %s936_s13, 2  ;;  %v1030_v1 = vshrl.u32 %v205_v0, 7  ;;  %v234_v14 = vrot.slane %v1041_v5, 7  ;;  %v287_v15 = vrot.slane %v1050_v11, 1  ;;  %v233_v17 = vrot.slane %v1053_v12, 7  ;;  %v1063_v18 = vld [vmem:[%s1022_s6 + $0x28] sm:$0xff] }
  0x3b   : > { %v283_v20 = vsel %vm280_vm1, %v281_v9, %v282_v10  ;;  %v284_v21 = vrot.slane %v1053_v12, 1  ;;  %v285_v22 = vrot.slane %v1056_v13, 1  ;;  %v1070_v23 = vld [vmem:[%s1022_s6 + $0x30] sm:$0xff]  ;;  %v236_v30 = vrot.slane %v1056_v13, 7  ;;  %v1084_v36 = vld [vmem:[%s1022_s6 + $0x38] sm:$0xff]  ;;  %v1093_v41 = vld [vmem:[%s1022_s6 + $0x40] sm:$0xff] }
  0x3c   : > { %s737_s30 = sshll.u32 %s180_s28, 2  ;;  %v207_v2 = vsub.s32 0, %v1030_v1  ;;  %v211_v3 = vsub.s32 2, %v1030_v1  ;;  %v235_v25 = vsel %vm231_vm0, %v232_v8, %v234_v14  ;;  %v288_v26 = vsel %vm280_vm1, %v282_v10, %v287_v15  ;;  %v1096_v42 = vld [vmem:[%s1022_s6 + $0x48] sm:$0xff]  ;;  %s894_s7 = smov 1   ;;  %v1117_v55 = vld [vmem:[%s1022_s6 + $0x50] sm:$0xff] }
  0x3d   : > { %s183_s20 = scalar_lea.vmem %s1527_s1, %s737_s30  ;;  %v341_v28 = vmax.f32 %v235_v25, %v288_v26  ;;  %v286_v29 = vsel %vm280_vm1, %v284_v21, %v285_v22  ;;  %v289_v31 = vrot.slane %v1063_v18, 1  ;;  %v238_v34 = vrot.slane %v1050_v11, 7  ;;  %v1126_v60 = vld [vmem:[%s1022_s6 + $0x58] sm:$0xff]  ;;  %s895_s8 = smov 127  }
  0x3e   : > { %v1043_v6 = vld [vmem:[%s183_s20] sm:$0xf]  ;;  %v291_v35 = vrot.slane %v1070_v23, 1  ;;  %v237_v38 = vsel %vm231_vm0, %v233_v17, %v236_v30  ;;  %v240_v40 = vrot.slane %v1063_v18, 7  ;;  %v293_v49 = vrot.slane %v1084_v36, 1  ;;  %s726_s14 = sshll.u32 %s1018_s27, 5 }
  0x3f   : > { %v208_v7 = vrot.slane %v1043_v6, %v207_v2  ;;  %v212_v16 = vrot.slane %v1043_v6, %v211_v3  ;;  %v1087_v37 = vmax.f32 %v341_v28, %v1041_v5  ;;  %v290_v39 = vsel %vm280_vm1, %v285_v22, %v289_v31  ;;  %v1134_v2 = vld [vmem:[%s1022_s6 + $0x60] sm:$0xff]  ;;  %s1394_s16 = scalar_lea.vmem [#allocation5], %s726_s14  ;;  %s739_s17 = sshll.u32 %s936_s13, 9 }
  0x40   : > { %v342_v44 = vmax.f32 %v237_v38, %v290_v39  ;;  %v239_v45 = vsel %vm231_vm0, %v234_v14, %v238_v34  ;;  %v292_v46 = vsel %vm280_vm1, %v287_v15, %v291_v35  ;;  %v241_v48 = vsel %vm231_vm0, %v236_v30, %v240_v40  ;;  %v1173_v38 = vld [vmem:[%s1022_s6 + $0x78] sm:$0xff]  ;;  %s632_s19 = sshll.u32 %s1394_s16, 4  ;;  %s1473_s25 = scalar_lea.hbm %s1528_s2, %s739_s17  ;;  %s1475_s19 = int_to_ptr.vmem [resolvable:$true] %s632_s19 }
  0x41   : > { %v278_v19 = vsel %vm231_vm0, %v208_v7, %v232_v8  ;;  %v279_v27 = vsel %vm231_vm0, %v212_v16, %v233_v17  ;;  %391 = vrot.lane.b32.xlu1 %v1087_v37, %s894_s7  ;;  %v343_v47 = vmax.f32 %v239_v45, %v292_v46  ;;  %v242_v50 = vrot.slane %v1070_v23, 7  ;;  %v1147_v17 = vld [vmem:[%s1022_s6 + $0x68] sm:$0xff]  ;;  %s618_s13 = scalar_lea.sflag [#allocation4], %s1018_s27  ;;  %s823_s26 = scalar_lea.vmem %s1475_s19, 512 }
  0x42   : > { %v339_v24 = vmax.f32 %v278_v19, %v283_v20  ;;  %v340_v33 = vmax.f32 %v279_v27, %v286_v29  ;;  %v1111_v51 = vmax.f32 %v342_v44, %v1056_v13  ;;  %v295_v52 = vrot.slane %v1093_v41, 1  ;;  %p824_p6 = scmp.ne.s32.totalorder %s1475_s19, %s823_s26  ;;  %p1567_p11 = scmp.ne.s32.totalorder %s1535_s21, 0 }
  0x43   : > { %v244_v53 = vrot.slane %v1084_v36, 7  ;;  %v297_v54 = vrot.slane %v1096_v42, 1  ;;  %v1120_v56 = vmax.f32 %v343_v47, %v1050_v11  ;;  %v294_v57 = vsel %vm280_vm1, %v289_v31, %v293_v49  ;;  %s897_s29 = smov [#allocation5]  }
  0x44   : > { %v1079_v32 = vmax.f32 %v339_v24, %v1038_v4  ;;  %v1101_v43 = vmax.f32 %v340_v33, %v1053_v12  ;;  %v243_v58 = vsel %vm231_vm0, %v238_v34, %v242_v50  ;;  %v246_v59 = vrot.slane %v1093_v41, 7  ;;  %v1158_v24 = vld [vmem:[%s1022_s6 + $0x70] sm:$0xff]  ;;  %p825_p12 = pnand %p824_p6, %p1567_p11  ;;  %s827_s5 = sshll.u32 %s897_s29, 4  ;;  %s828_s5 = int_to_ptr.vmem [resolvable:$false] %s827_s5 }
  0x45   : > { %v344_v61 = vmax.f32 %v241_v48, %v294_v57  ;;  %v296_v62 = vsel %vm280_vm1, %v291_v35, %v295_v52  ;;  %v245_v63 = vsel %vm231_vm0, %v240_v40, %v244_v53  ;;  %v298_v0 = vsel %vm280_vm1, %v293_v49, %v297_v54  ;;  %393 = vrot.lane.b32.xlu1 %v1111_v51, %s894_s7  ;;  %s829_s6 = scalar_lea.vmem %s828_s5, 1024  ;;  %p830_p9 = scmp.lt.s32.totalorder %s1475_s19, %s828_s5 }
  0x46   : > { %387 = vrot.lane.b32.xlu0 %v1079_v32, %s894_s7  ;;  %v345_v3 = vmax.f32 %v243_v58, %v296_v62  ;;  %v346_v7 = vmax.f32 %v245_v63, %v298_v0  ;;  %v247_v8 = vsel %vm231_vm0, %v242_v50, %v246_v59  ;;  %v299_v9 = vrot.slane %v1117_v55, 1  ;;  %p826_p8 = pneg %p825_p12  ;;  %p831_p13 = scmp.lt.s32.totalorder %s829_s6, %s823_s26 }
  0x47   : > { %v1141_v10 = vmax.f32 %v344_v61, %v1063_v18  ;;  %v248_v14 = vrot.slane %v1096_v42, 7  ;;  %v301_v15 = vrot.slane %v1126_v60, 1  ;;  %v250_v16 = vrot.slane %v1117_v55, 7 }
  0x48   : > { %v1150_v19 = vmax.f32 %v345_v3, %v1070_v23  ;;  %v1153_v20 = vmax.f32 %v346_v7, %v1084_v36  ;;  %v300_v21 = vsel %vm280_vm1, %v295_v52, %v299_v9  ;;  %v303_v22 = vrot.slane %v1134_v2, 1  ;;  %p832_p1 = por %p831_p13, %p830_p9 }
  0x49   : > { %v347_v25 = vmax.f32 %v247_v8, %v300_v21  ;;  %v249_v26 = vsel %vm231_vm0, %v244_v53, %v248_v14  ;;  %v302_v27 = vsel %vm280_vm1, %v297_v54, %v301_v15  ;;  %v251_v28 = vsel %vm231_vm0, %v246_v59, %v250_v16  ;;  %397 = vrot.lane.b32.xlu1 %v1141_v10, %s894_s7 }
  0x4a   : > { %389 = vrot.lane.b32.xlu0 %v1101_v43, %s894_s7  ;;  %v348_v29 = vmax.f32 %v249_v26, %v302_v27  ;;  %v304_v30 = vsel %vm280_vm1, %v299_v9, %v303_v22  ;;  %v252_v31 = vrot.slane %v1126_v60, 7  ;;  %v305_v33 = vrot.slane %v1147_v17, 1  ;;  %p833_p3 = pnand %p832_p1, %p826_p8 }
  0x4b   : > { %v254_v34 = vrot.slane %v1134_v2, 7  ;;  %v307_v35 = vrot.slane %v1158_v24, 1  ;;  %v329_v39 = vsub.s32 1, %v1030_v1  ;;  %v333_v40 = vsub.s32 3, %v1030_v1 }
  0x4c   : > { %v253_v44 = vsel %vm231_vm0, %v248_v14, %v252_v31  ;;  %v306_v45 = vsel %vm280_vm1, %v301_v15, %v305_v33  ;;  %v256_v46 = vrot.slane %v1147_v17, 7  ;;  %v1183_v47 = vmax.f32 %v347_v25, %v1093_v41 }
  0x4d   : > { %v1186_v48 = vmax.f32 %v348_v29, %v1096_v42  ;;  %v349_v49 = vmax.f32 %v251_v28, %v304_v30  ;;  %v350_v50 = vmax.f32 %v253_v44, %v306_v45  ;;  %401 = vrot.lane.b32.xlu1 %v1153_v20, %s894_s7  ;;  %v255_v1 = vsel %vm231_vm0, %v250_v16, %v254_v34 }
  0x4e   : > { %395 = vrot.lane.b32.xlu0 %v1120_v56, %s894_s7  ;;  %v308_v52 = vsel %vm280_vm1, %v303_v22, %v307_v35  ;;  %v309_v53 = vrot.slane %v1173_v38, 1  ;;  %v258_v54 = vrot.slane %v1158_v24, 7  ;;  %v257_v57 = vsel %vm231_vm0, %v252_v31, %v256_v46 }
  0x4f   : > { %v330_v58 = vrot.slane %v1043_v6, %v329_v39  ;;  %v260_v59 = vrot.slane %v1173_v38, 7  ;;  %v334_v61 = vrot.slane %v1043_v6, %v333_v40  ;;  %v1202_v63 = vmax.f32 %v349_v49, %v1117_v55 }
  0x50   : > { %v310_v62 = vsel %vm280_vm1, %v305_v33, %v309_v53  ;;  %v351_v0 = vmax.f32 %v255_v1, %v308_v52  ;;  %v1207_v3 = vmax.f32 %v350_v50, %v1126_v60  ;;  %v259_v8 = vsel %vm231_vm0, %v254_v34, %v258_v54 }
  0x51   : > { %405 = vrot.lane.b32.xlu1 %v1186_v48, %s894_s7  ;;  %v352_v7 = vmax.f32 %v257_v57, %v310_v62  ;;  %v337_v6 = vsel %vm280_vm1, %v307_v35, %v330_v58  ;;  %v261_v9 = vsel %vm231_vm0, %v256_v46, %v260_v59  ;;  %v338_v14 = vsel %vm280_vm1, %v309_v53, %v334_v61 }
  0x52   : > { %399 = vrot.lane.b32.xlu0 %v1150_v19, %s894_s7  ;;  %v1216_v15 = vmax.f32 %v351_v0, %v1134_v2  ;;  %v353_v16 = vmax.f32 %v259_v8, %v337_v6  ;;  %v354_v22 = vmax.f32 %v261_v9, %v338_v14  ;;  %vm419_vm2 = vcmask 7168  }
  0x53   : > { %v1221_v21 = vmax.f32 %v352_v7, %v1147_v17  ;;  %vm484_vm3 = vcmask 1039360   ;;  %vm565_vm4 = vcmp.ge.f32.partialorder %v1038_v4, 0.7  ;;  %vm567_vm5 = vcmp.ge.f32.partialorder %v1041_v5, 0.7 }
  0x54   : > { %v1226_v25 = vmax.f32 %v353_v16, %v1158_v24  ;;  %v1231_v26 = vmax.f32 %v354_v22, %v1173_v38  ;;  %vm568_vm7 = vcmp.ge.f32.partialorder %v1056_v13, 0.7  ;;  %vm566_vm10 = vcmp.ge.f32.partialorder %v1053_v12, 0.7 }
  0x55   : > { %409 = vrot.lane.b32.xlu1 %v1207_v3, %s894_s7  ;;  %vm569_vm0 = vcmp.ge.f32.partialorder %v1050_v11, 0.7 }
  0x56   : > { %403 = vrot.lane.b32.xlu0 %v1183_v47, %s894_s7 }
  0x59   : > { %413 = vrot.lane.b32.xlu1 %v1221_v21, %s894_s7 }
  0x5a   : > { %407 = vrot.lane.b32.xlu0 %v1202_v63, %s894_s7 }
  0x5d   : > { %417 = vrot.lane.b32.xlu1 %v1231_v26, %s894_s7 }
  0x5e   : > { %411 = vrot.lane.b32.xlu0 %v1216_v15, %s894_s7 }
  0x61   : > { %454 = vrot.lane.b32.xlu1 %v1101_v43, %s895_s8 }
  0x62   : > { %415 = vrot.lane.b32.xlu0 %v1226_v25, %s894_s7 }
  0x65   : > { %458 = vrot.lane.b32.xlu1 %v1111_v51, %s895_s8 }
  0x66   : > { %452 = vrot.lane.b32.xlu0 %v1079_v32, %s895_s8 }
  0x69   : > { %462 = vrot.lane.b32.xlu1 %v1141_v10, %s895_s8 }
  0x6a   : > { %456 = vrot.lane.b32.xlu0 %v1087_v37, %s895_s8 }
  0x6d   : > { %466 = vrot.lane.b32.xlu1 %v1153_v20, %s895_s8 }
  0x6e   : > { %460 = vrot.lane.b32.xlu0 %v1120_v56, %s895_s8 }
  0x71   : > { %470 = vrot.lane.b32.xlu1 %v1186_v48, %s895_s8 }
  0x72   : > { %464 = vrot.lane.b32.xlu0 %v1150_v19, %s895_s8 }
  0x75   : > { %474 = vrot.lane.b32.xlu1 %v1207_v3, %s895_s8 }
  0x76   : > { %468 = vrot.lane.b32.xlu0 %v1183_v47, %s895_s8 }
  0x79   : > { %478 = vrot.lane.b32.xlu1 %v1221_v21, %s895_s8 }
  0x7a   : > { %472 = vrot.lane.b32.xlu0 %v1202_v63, %s895_s8 }
  0x7d   : > { %482 = vrot.lane.b32.xlu1 %v1231_v26, %s895_s8 }
  0x7e   : > { %476 = vrot.lane.b32.xlu0 %v1216_v15, %s895_s8 }
  0x82   : > { %480 = vrot.lane.b32.xlu0 %v1226_v25, %s895_s8 }
  0xb3   : > { %v392_v28 = vpop.permute.xlu1 %391 }
  0xb4   : > { %v445_v6 = vsel %vm419_vm2, -inf, %v392_v28 }
  0xb7   : > { %v394_v30 = vpop.permute.xlu1 %393 }
  0xb8   : > { %v388_v27 = vpop.permute.xlu0 %387  ;;  %v421_v9 = vsel %vm419_vm2, %v392_v28, %v394_v30 }
  0xb9   : > { %v444_v54 = vsel %vm419_vm2, -inf, %v388_v27 }
  0xbb   : > { %v398_v33 = vpop.permute.xlu1 %397 }
  0xbc   : > { %v390_v29 = vpop.permute.xlu0 %389 }
  0xbd   : > { %v420_v59 = vsel %vm419_vm2, %v388_v27, %v390_v29 }
  0xbf   : > { %v402_v35 = vpop.permute.xlu1 %401 }
  0xc0   : > { %v396_v31 = vpop.permute.xlu0 %395 }
  0xc3   : > { %v1255_v40 = vpop.permute.xlu1 %405 }
  0xc4   : > { %v400_v34 = vpop.permute.xlu0 %399 }
  0xc7   : > { %v1259_v45 = vpop.permute.xlu1 %409 }
  0xc8   : > { %v1253_v39 = vpop.permute.xlu0 %403 }
  0xcb   : > { %v1263_v49 = vpop.permute.xlu1 %413 }
  0xcc   : > { %v1257_v44 = vpop.permute.xlu0 %407 }
  0xcf   : > { %v1267_v1 = vpop.permute.xlu1 %417 }
  0xd0   : > { %v1261_v46 = vpop.permute.xlu0 %411 }
  0xd3   : > { %v455_v53 = vpop.permute.xlu1 %454 }
  0xd4   : > { %v1265_v50 = vpop.permute.xlu0 %415  ;;  %v509_v58 = vsel %vm484_vm3, %v455_v53, -inf }
  0xd5   : > { %v518_v62 = vmax.f32 %v420_v59, %v509_v58 }
  0xd7   : > { %v459_v8 = vpop.permute.xlu1 %458  ;;  %v534_v27 = vmax.f32 %v518_v62, %v1101_v43  ;;  %v447_v62 = vsel %vm419_vm2, -inf, %v400_v34 }
  0xd8   : > { %v453_v52 = vpop.permute.xlu0 %452  ;;  %v510_v16 = vsel %vm484_vm3, %v459_v8, -inf }
  0xd9   : > { %v485_v57 = vsel %vm484_vm3, %v453_v52, %v455_v53  ;;  %v520_v52 = vmax.f32 %v421_v9, %v510_v16  ;;  %v446_v53 = vsel %vm419_vm2, -inf, %v396_v31  ;;  %vm550_vm11 = vcmp.eq.f32.partialorder %v1053_v12, %v534_v27 }
  0xda   : > { %v517_v61 = vmax.f32 %v444_v54, %v485_v57  ;;  %v422_v54 = vsel %vm419_vm2, %v396_v31, %v398_v33  ;;  %vm1319_vm15 = vmand %vm550_vm11, %vm566_vm10  ;;  %vm572_vm10 = vcmp.ge.f32.partialorder %v1084_v36, 0.7 }
  0xdb   : > { %v536_v28 = vmax.f32 %v520_v52, %v1111_v51  ;;  %v463_v30 = vpop.permute.xlu1 %462 }
  0xdc   : > { %v457_v0 = vpop.permute.xlu0 %456  ;;  %v533_v7 = vmax.f32 %v517_v61, %v1079_v32  ;;  %v511_v43 = vsel %vm484_vm3, %v463_v30, -inf }
  0xdd   : > { %v486_v14 = vsel %vm484_vm3, %v457_v0, %v459_v8  ;;  %vm552_vm9 = vcmp.eq.f32.partialorder %v1056_v13, %v536_v28  ;;  %v522_v59 = vmax.f32 %v422_v54, %v511_v43  ;;  %v450_v54 = vsel %vm419_vm2, -inf, %v1261_v46 }
  0xde   : > { %v519_v22 = vmax.f32 %v445_v6, %v486_v14  ;;  %vm549_vm6 = vcmp.eq.f32.partialorder %v1038_v4, %v533_v7  ;;  %v423_v4 = vsel %vm419_vm2, %v400_v34, %v402_v35  ;;  %vm1313_vm14 = vmand %vm552_vm9, %vm568_vm7  ;;  %v448_v6 = vsel %vm419_vm2, -inf, %v1253_v39 }
  0xdf   : > { %vm1297_vm12 = vmand %vm549_vm6, %vm565_vm4  ;;  %v538_v61 = vmax.f32 %v522_v59, %v1141_v10  ;;  %v467_v12 = vpop.permute.xlu1 %466 }
  0xe0   : > { %v461_v29 = vpop.permute.xlu0 %460  ;;  %v535_v32 = vmax.f32 %v519_v22, %v1087_v37  ;;  %v512_v7 = vsel %vm484_vm3, %v467_v12, -inf }
  0xe1   : > { %v487_v57 = vsel %vm484_vm3, %v461_v29, %v463_v30  ;;  %v524_v10 = vmax.f32 %v423_v4, %v512_v7  ;;  %vm554_vm6 = vcmp.eq.f32.partialorder %v1063_v18, %v538_v61  ;;  %v449_v29 = vsel %vm419_vm2, -inf, %v1257_v44 }
  0xe2   : > { %vm551_vm8 = vcmp.eq.f32.partialorder %v1041_v5, %v535_v32  ;;  %v521_v58 = vmax.f32 %v446_v53, %v487_v57 }
  0xe3   : > { %vm1303_vm13 = vmand %vm551_vm8, %vm567_vm5  ;;  %vm570_vm5 = vcmp.ge.f32.partialorder %v1063_v18, 0.7  ;;  %vm571_vm8 = vcmp.ge.f32.partialorder %v1070_v23, 0.7  ;;  %v540_v34 = vmax.f32 %v524_v10, %v1153_v20  ;;  %v471_v35 = vpop.permute.xlu1 %470 }
  0xe4   : > { %v465_v51 = vpop.permute.xlu0 %464  ;;  %v537_v33 = vmax.f32 %v521_v58, %v1120_v56  ;;  %v513_v14 = vsel %vm484_vm3, %v471_v35, -inf  ;;  %vm1350_vm11 = vmand %vm554_vm6, %vm570_vm5  ;;  %v426_v58 = vsel %vm419_vm2, %v1261_v46, %v1263_v49 }
  0xe5   : > { %v488_v5 = vsel %vm484_vm3, %v465_v51, %v467_v12  ;;  %vm1552_vm6 = vmpackc.low %vm1303_vm13, %vm1297_vm12  ;;  %v451_v12 = vsel %vm419_vm2, -inf, %v1265_v50 }
  0xe6   : > { %vm553_vm1 = vcmp.eq.f32.partialorder %v1050_v11, %v537_v33  ;;  %v523_v56 = vmax.f32 %v447_v62, %v488_v5  ;;  %vm1553_vm12 = vmpackc.low %vm1313_vm14, %vm1319_vm15 }
  0xe7   : > { %vm1340_vm9 = vmand %vm553_vm1, %vm569_vm0  ;;  %vm556_vm1 = vcmp.eq.f32.partialorder %v1084_v36, %v540_v34  ;;  %v425_v36 = vsel %vm419_vm2, %v1257_v44, %v1259_v45  ;;  %v896_v44 = vmov 0  }
  0xe8   : > { %v469_v13 = vpop.permute.xlu0 %468  ;;  %v539_v11 = vmax.f32 %v523_v56, %v1150_v19  ;;  %v424_v19 = vsel %vm419_vm2, %v1253_v39, %v1255_v40  ;;  %vm1359_vm4 = vmand %vm556_vm1, %vm572_vm10  ;;  %v475_v40 = vpop.permute.xlu1 %474  ;;  %vm573_vm10 = vcmp.ge.f32.partialorder %v1093_v41, 0.7 }
  0xe9   : > { %v489_v18 = vsel %vm484_vm3, %v469_v13, %v471_v35  ;;  %v526_v22 = vmax.f32 %v424_v19, %v513_v14  ;;  %v514_v32 = vsel %vm484_vm3, %v475_v40, -inf }
  0xea   : > { %vm555_vm0 = vcmp.eq.f32.partialorder %v1070_v23, %v539_v11  ;;  %v525_v16 = vmax.f32 %v448_v6, %v489_v18  ;;  %v528_v28 = vmax.f32 %v425_v36, %v514_v32 }
  0xeb   : > { %vm587_vm7 = vmand %vm555_vm0, %vm571_vm8  ;;  %v542_v30 = vmax.f32 %v526_v22, %v1186_v48 }
  0xec   : > { %v473_v52 = vpop.permute.xlu0 %472  ;;  %v541_v39 = vmax.f32 %v525_v16, %v1183_v47  ;;  %vm598_vm5 = vmpackc.low %vm587_vm7, %vm1340_vm9  ;;  %vm575_vm7 = vcmp.ge.f32.partialorder %v1117_v55, 0.7  ;;  %vm576_vm9 = vcmp.ge.f32.partialorder %v1126_v60, 0.7  ;;  %v544_v57 = vmax.f32 %v528_v28, %v1207_v3  ;;  %v479_v43 = vpop.permute.xlu1 %478 }
  0xed   : > { %v490_v23 = vsel %vm484_vm3, %v473_v52, %v475_v40  ;;  %vm599_vm8 = vmpackc.even %vm598_vm5, %vm1552_vm6  ;;  %v515_v51 = vsel %vm484_vm3, %v479_v43, -inf  ;;  %vm558_vm1 = vcmp.eq.f32.partialorder %v1096_v42, %v542_v30  ;;  %v1554_v3 = vmov 0 }
  0xee   : > { %v527_v47 = vmax.f32 %v449_v29, %v490_v23  ;;  %vm601_vm0 = vmpackc.low %vm1359_vm4, %vm1350_vm11  ;;  %v609_v45 = vsel %vm599_vm8, 16843009, %v896_v44  ;;  %vm557_vm4 = vcmp.eq.f32.partialorder %v1093_v41, %v541_v39  ;;  %vm560_vm15 = vcmp.eq.f32.partialorder %v1126_v60, %v544_v57 }
  0xef   : > { %vm602_vm13 = vmpackc.even %vm601_vm0, %vm1553_vm12  ;;  %613 = vst [vmem:[%s1394_s16] sm:$0xff] %v609_v45  ;;  %vm574_vm11 = vcmp.ge.f32.partialorder %v1096_v42, 0.7  ;;  %v427_v41 = vsel %vm419_vm2, %v1265_v50, %v1267_v1  ;;  %vm577_vm0 = vcmp.ge.f32.partialorder %v1134_v2, 0.7 }
  0xf0   : > { %v477_v53 = vpop.permute.xlu0 %476  ;;  %v543_v48 = vmax.f32 %v527_v47, %v1202_v63  ;;  %v610_v59 = vsel %vm602_vm13, 16843009, %v896_v44  ;;  %v530_v63 = vmax.f32 %v426_v58, %v515_v51  ;;  %vm1415_vm5 = vmand %vm557_vm4, %vm573_vm10  ;;  %v483_v42 = vpop.permute.xlu1 %482  ;;  %vm579_vm13 = vcmp.ge.f32.partialorder %v1158_v24, 0.7 }
  0xf1   : > { %v491_v37 = vsel %vm484_vm3, %v477_v53, %v479_v43  ;;  %614 = vst [vmem:[%s1394_s16 + $0x8] sm:$0xff] %v610_v59  ;;  %v1555_v3 = vsel %vm1415_vm5, 4294967295, %v1554_v3  ;;  %vm1434_vm8 = vmand %vm560_vm15, %vm576_vm9  ;;  %vm578_vm9 = vcmp.ge.f32.partialorder %v1147_v17, 0.7 }
  0xf2   : > { %vm559_vm14 = vcmp.eq.f32.partialorder %v1117_v55, %v543_v48  ;;  %v529_v31 = vmax.f32 %v450_v54, %v491_v37  ;;  %v546_v61 = vmax.f32 %v530_v63, %v1221_v21  ;;  %v1558_v55 = vmov 0  ;;  %vm1440_vm10 = vmand %vm558_vm1, %vm574_vm11 }
  0xf3   : > { %vm1421_vm6 = vmand %vm559_vm14, %vm575_vm7  ;;  %v1559_v55 = vsel %vm1434_vm8, 4294967295, %v1558_v55  ;;  %v1560_v21 = vmov 0  ;;  %vm580_vm14 = vcmp.ge.f32.partialorder %v1173_v38, 0.7 }
  0xf4   : > { %v481_v46 = vpop.permute.xlu0 %480  ;;  %v545_v33 = vmax.f32 %v529_v31, %v1216_v15  ;;  %v516_v15 = vsel %vm484_vm3, %v483_v42, -inf  ;;  %v1561_v21 = vsel %vm1440_vm10, 4294967295, %v1560_v21 }
  0xf5   : > { %v492_v62 = vsel %vm484_vm3, %v481_v46, %v483_v42  ;;  %v532_v50 = vmax.f32 %v427_v41, %v516_v15  ;;  %vm562_vm3 = vcmp.eq.f32.partialorder %v1147_v17, %v546_v61 }
  0xf6   : > { %vm561_vm7 = vcmp.eq.f32.partialorder %v1134_v2, %v545_v33  ;;  %v531_v4 = vmax.f32 %v451_v12, %v492_v62  ;;  %vm594_vm15 = vmand %vm562_vm3, %vm578_vm9  ;;  %vm1564_vm9 = vnez %v1559_v55 }
  0xf7   : > { %v548_v2 = vmax.f32 %v532_v50, %v1231_v26  ;;  %vm593_vm4 = vmand %vm561_vm7, %vm577_vm0  ;;  %vm1562_vm0 = vnez %v1555_v3 }
  0xf8   : > { %v547_v60 = vmax.f32 %v531_v4, %v1226_v25  ;;  %vm1563_vm7 = vmpackc.low %vm1421_vm6, %vm1562_vm0 }
  0xf9   : > { %vm564_vm1 = vcmp.eq.f32.partialorder %v1173_v38, %v548_v2 }
  0xfa   : > { %vm563_vm11 = vcmp.eq.f32.partialorder %v1158_v24, %v547_v60  ;;  %vm596_vm5 = vmand %vm564_vm1, %vm580_vm14 }
  0xfb   : > { %vm595_vm2 = vmand %vm563_vm11, %vm579_vm13 }
  0xfc   : > { %vm604_vm12 = vmpackc.low %vm595_vm2, %vm593_vm4  ;;  %vm1565_vm2 = vnez %v1561_v21 }
  0xfd   : > { %vm605_vm10 = vmpackc.even %vm604_vm12, %vm1563_vm7 }
  0xfe   : > { %vm607_vm8 = vmpackc.low %vm596_vm5, %vm594_vm15  ;;  %v611_v17 = vsel %vm605_vm10, 16843009, %v896_v44 }
  0xff   : > { %vm1566_vm3 = vmpackc.low %vm1564_vm9, %vm1565_vm2  ;;  %615 = vst [vmem:[%s1394_s16 + $0x10] sm:$0xff] %v611_v17 }
 0x100   : > { %vm608_vm6 = vmpackc.even %vm607_vm8, %vm1566_vm3 }
 0x101   : > { %v612_v24 = vsel %vm608_vm6, 16843009, %v896_v44 }
 0x102   : > { %616 = vst [vmem:[%s1394_s16 + $0x18] sm:$0xff] %v612_v24 }
 0x103   : > { %836 = shalt.err (!%p833_p3)
}
 0x104   : > { %s837_s28 = scalar_lea.hbm %s1473_s25, 512  ;;  %s841_s4 = scalar_lea.hbm %s1528_s2, 1536 }
 0x105   : > { %p838_p4 = scmp.ne.s32.totalorder %s1473_s25, %s837_s28  ;;  %p842_p2 = scmp.lt.u32.totalorder %s1473_s25, %s1528_s2 }
 0x106   : > { %p843_p7 = scmp.lt.u32.totalorder %s841_s4, %s837_s28  ;;  %p845_p6 = scmp.lt.u32.totalorder %s837_s28, %s1473_s25 }
 0x107   : > { %p839_p5 = pnand %p838_p4, %p1567_p11 }
 0x108   : > { %p844_p10 = por %p843_p7, %p842_p2 }
 0x109   : > { %p840_p0 = pneg %p839_p5 }
 0x10a   : > { %p846_p12 = por %p845_p6, %p844_p10 }
 0x10c   : > { %p847_p8 = pnand %p846_p12, %p840_p0 }
 0x10e   : > { %850 = shalt.err (!%p847_p8)
}
 0x10f   : > { %s898_s8 = smov 256   ;;  %s899_s14 = smov 16  }
 0x110   : > { %742 = dma.vmem_to_hbm [thread:$0]  (%p1567_p11), %s1475_s19, 512, %s1473_s25, %s618_s13, %s898_s8, %s898_s8, %s899_s14  }
 0x111 PF: > { %p753_p9 = scmp.ge.s32.totalorder %s889_s12, 2  ;;  %s647_s16 = sand.u32 1, %s877_s9  }
 0x112   : > { %p1568_p13 = scmp.ne.s32.totalorder %s1536_s22, 0  ;;  %s648_s17 = scalar_lea.sflag [#allocation4], %s647_s16 }
 0x114   : > { %p749_p1 = pnand %p753_p9, %p1568_p13 }
 0x116   : > { %872 = dma.done.wait (!%p749_p1), %s648_s17, 512  }
 0x117   : > { %874 = vsyncadd (!%p749_p1), %s648_s17, 4294966784  ;;  %p15_p3 = scmp.ge.s32.totalorder %s940_s15, 5   ;;  %s1569_s9 = smov %s881_s10 }
 0x118   : > { %s1570_s10 = smov %s885_s11  ;;  %s1571_s11 = smov %s952_s18 }
 0x119   : > { %s1572_s12 = smov %s940_s15  ;;  %17 = sbr.rel (!%p15_p3) target bundleno = 5 (0x5), region = 76 }
 0x120   :  { %653 = vsyncpa [#allocation3], 1 }
 0x121   :  { %655 = vsyncpa [#allocation3 + $0x1], 1 }
 0x122   :  { %656 = vsyncpa [#allocation4], 1 }
 0x123   :  { %658 = vsyncpa [#allocation4 + $0x1], 1 }

</bundles_post_ra>
